<compile_context>
chip_gen: v7x
topology: tpu7x:2x2x1
jax: 0.10.0
libtpu: 0.0.40
codegen_flags: <defaults>
</compile_context>

<pallas_src>
import functools

import jax
import jax.numpy as jnp
from jax import lax
from jax.experimental import pallas as pl
from jax.experimental.pallas import tpu as pltpu

B, CIN, H, W = 2, 4, 16, 16          # input  [B, CIN, H, W]  (NCHW)
COUT, K = 16, 3                      # conv:  CIN -> COUT, 3x3, pad 1
NUM_CLASSES = 8                      # head:  COUT -> NUM_CLASSES
KK = K * K
HW = H * W
BHW = B * HW                         # 512 lanes = 4 x 128 (lane-aligned)


def _vmem():
    return pl.BlockSpec(memory_space=pltpu.MemorySpace.VMEM)


# --------------------------- fused kernel body --------------------------------
def _fused_pipeline_math(x_ref, w_ref, cbias_ref, mask_ref, pool_ref,
                         fcw_ref, fcb_ref, im2col_ref):
    """conv3x3(+bias,ReLU) -> GAP -> linear, entirely in VMEM / vregs."""
    # Lane-aligned activation slab [CIN, BHW]: the per-batch blocks land at
    # lane offsets 0 and 256 (multiples of 128) -> aligned, no margins,
    # no zero-init.
    xvals = jnp.concatenate([x_ref[b] for b in range(B)], axis=-1)

    # im2col staging: 9 lane-rotated (XLU) + host-mask-multiplied taps, each a
    # single full-lane-width store into the [9*CIN, BHW] scratch.  Rotation
    # wrap-around and cross-batch reads are exactly the positions the SAME-pad
    # mask zeroes, so no garbage ever reaches the matmul.
    for kh in range(K):
        for kw in range(K):
            t = kh * K + kw
            shift = (kh - 1) * W + (kw - 1)
            if shift == 0:
                # centre tap: no shift, mask is all-ones.
                im2col_ref[pl.ds(t * CIN, CIN), :] = xvals
            else:
                tap = pltpu.roll(xvals, (-shift) % BHW, axis=1)  # tap[:,q] = x[:,q+shift]
                im2col_ref[pl.ds(t * CIN, CIN), :] = tap * mask_ref[pl.ds(t, 1), :]

    # ONE fused conv matmul on the MXU: [COUT,36] x [36,BHW], bf16 operands,
    # f32 accumulation.
    acc = jnp.dot(w_ref[...], im2col_ref[...].astype(jnp.bfloat16),
                  preferred_element_type=jnp.float32)            # [COUT, BHW]

    # backbone epilogue: bias + ReLU (f32 VPU path, OK on v5e too).
    feat_t = jnp.maximum(acc + cbias_ref[...], 0.0)              # [COUT, BHW]

    # neck: GAP as a transposed-RHS matmul, contracting the lane (BHW) dim of
    # the lane-dense [B, BHW] pool matrix -> [B, COUT] directly (no transpose).
    neck = lax.dot_general(pool_ref[...], feat_t, (((1,), (1,)), ((), ())),
                           preferred_element_type=jnp.float32)   # [B, COUT]

    # head: linear (fc_w pre-transposed to [COUT, NUM_CLASSES]).
    head = (jnp.dot(neck, fcw_ref[...], preferred_element_type=jnp.float32)
            + fcb_ref[...])                                      # [B, NUM_CLASSES]
    return feat_t, neck, head


def _kernel_head_only(x_ref, w_ref, cbias_ref, mask_ref, pool_ref, fcw_ref,
                      fcb_ref, head_ref, im2col_ref):
    _, _, head = _fused_pipeline_math(x_ref, w_ref, cbias_ref, mask_ref,
                                      pool_ref, fcw_ref, fcb_ref, im2col_ref)
    head_ref[...] = head


def _kernel_flow(x_ref, w_ref, cbias_ref, mask_ref, pool_ref, fcw_ref,
                 fcb_ref, feat_ref, neck_ref, head_ref, im2col_ref):
    feat_t, neck, head = _fused_pipeline_math(x_ref, w_ref, cbias_ref,
                                              mask_ref, pool_ref, fcw_ref,
                                              fcb_ref, im2col_ref)
    feat_ref[...] = feat_t
    neck_ref[...] = neck
    head_ref[...] = head


# ------------------------------ host wrappers ---------------------------------
def prepare_params(raw_params):
    """One-time re-layout of PyTorch-convention parameters for the fused kernel."""
    conv_w = jnp.asarray(raw_params["conv_w"], jnp.float32)   # [COUT, CIN, K, K]
    conv_b = jnp.asarray(raw_params["conv_b"], jnp.float32)   # [COUT]
    fc_w = jnp.asarray(raw_params["fc_w"], jnp.float32)       # [NUM_CLASSES, COUT]
    fc_b = jnp.asarray(raw_params["fc_b"], jnp.float32)       # [NUM_CLASSES]

    # Combined im2col weight: w_comb[o, t*CIN + c] = conv_w[o, c, kh, kw],
    # t = kh*K + kw.  Stored bf16 (MXU-native operand).
    w_comb = conv_w.transpose(2, 3, 1, 0).reshape(KK * CIN, COUT).T
    w_comb = w_comb.astype(jnp.bfloat16)                      # [COUT, 9*CIN]

    # SAME-padding boundary masks for the 9 taps, precomputed once: [9, BHW].
    pos = jnp.arange(BHW, dtype=jnp.int32)
    hh = (pos // W) % H
    ww = pos % W
    masks = []
    for kh in range(K):
        for kw in range(K):
            dh, dw = kh - 1, kw - 1
            valid = ((hh + dh >= 0) & (hh + dh < H) &
                     (ww + dw >= 0) & (ww + dw < W))
            masks.append(valid.astype(jnp.float32))
    mask = jnp.stack(masks, axis=0)                           # [9, BHW]

    # GAP pool matrix, lane-dense layout: pool[b, q] = 1/HW iff q // HW == b.
    pool = jnp.repeat(jnp.eye(B, dtype=jnp.float32), HW, axis=1) * (1.0 / HW)

    return dict(
        w_comb=w_comb,                         # [COUT, 9*CIN] bf16
        conv_b=conv_b.reshape(COUT, 1),        # broadcasts along lanes
        mask=mask,                             # [9, BHW]
        pool=pool,                             # [B, BHW]  (lane-dense)
        fc_wT=fc_w.T,                          # [COUT, NUM_CLASSES]
        fc_b=fc_b.reshape(1, NUM_CLASSES),
    )


@functools.partial(jax.jit, static_argnames="return_flow")
def pipeline_forward(batch_data, params, return_flow=False):
    x3 = batch_data.astype(jnp.float32).reshape(B, CIN, HW)   # free reshape
    ins = (x3, params["w_comb"], params["conv_b"], params["mask"],
           params["pool"], params["fc_wT"], params["fc_b"])
    in_specs = [_vmem()] * len(ins)
    scratch = [pltpu.VMEM((KK * CIN, BHW), jnp.float32)]      # im2col slab

    if not return_flow:
        # Hot path: only the [B, NUM_CLASSES] logits ever touch HBM.
        return pl.pallas_call(
            _kernel_head_only,
            out_shape=jax.ShapeDtypeStruct((B, NUM_CLASSES), jnp.float32),
            in_specs=in_specs,
            out_specs=_vmem(),
            scratch_shapes=scratch,
        )(*ins)

    feat_t, neck, head = pl.pallas_call(
        _kernel_flow,
        out_shape=(
            jax.ShapeDtypeStruct((COUT, BHW), jnp.float32),   # lane-dense store
            jax.ShapeDtypeStruct((B, COUT), jnp.float32),
            jax.ShapeDtypeStruct((B, NUM_CLASSES), jnp.float32),
        ),
        in_specs=in_specs,
        out_specs=(_vmem(), _vmem(), _vmem()),
        scratch_shapes=scratch,
    )(*ins)
    # Layout glue only on the debug/flow path: [COUT, B*HW] -> NCHW.
    backbone = feat_t.reshape(COUT, B, H, W).transpose(1, 0, 2, 3)
    return dict(backbone=backbone, neck=neck, head=head)


# ------------------------------ plain-JAX reference ---------------------------
def _reference_forward(batch_data, raw_params):
    feat = lax.conv_general_dilated(
        batch_data, raw_params["conv_w"], window_strides=(1, 1), padding="SAME",
        dimension_numbers=("NCHW", "OIHW", "NCHW"))
    feat = jnp.maximum(feat + raw_params["conv_b"][None, :, None, None], 0.0)
    neck = feat.mean(axis=(2, 3))
    head = neck @ raw_params["fc_w"].T + raw_params["fc_b"][None, :]
    return feat, neck, head


if __name__ == "__main__":
    key = jax.random.PRNGKey(0)
    kx, kw1, kb1, kw2, kb2 = jax.random.split(key, 5)

    x = jax.random.normal(kx, (B, CIN, H, W), dtype=jnp.float32)
    raw_params = dict(
        conv_w=0.1 * jax.random.normal(kw1, (COUT, CIN, K, K), jnp.float32),
        conv_b=0.01 * jax.random.normal(kb1, (COUT,), jnp.float32),
        fc_w=0.1 * jax.random.normal(kw2, (NUM_CLASSES, COUT), jnp.float32),
        fc_b=0.01 * jax.random.normal(kb2, (NUM_CLASSES,), jnp.float32),
    )
    params = prepare_params(raw_params)      # one-time weight re-layout

    out = pipeline_forward(x, params, return_flow=False)
    jax.block_until_ready(out)
    assert out.shape == (B, NUM_CLASSES), out.shape

    flow = pipeline_forward(x, params, return_flow=True)
    jax.block_until_ready(flow["head"])
    assert flow["backbone"].shape == (B, COUT, H, W)
    assert flow["neck"].shape == (B, COUT)
    assert flow["head"].shape == (B, NUM_CLASSES)

    # Numerical check against the plain-JAX reference of the same module.
    # (bf16 MXU operands for the conv -> slightly looser tolerance on the
    #  per-pixel feature map; pooled/linear outputs stay well within 1e-2.)
    ref_feat, ref_neck, ref_head = _reference_forward(x, raw_params)
    assert jnp.allclose(out, ref_head, rtol=1e-2, atol=1e-2)
    assert jnp.allclose(flow["head"], ref_head, rtol=1e-2, atol=1e-2)
    assert jnp.allclose(flow["neck"], ref_neck, rtol=1e-2, atol=1e-2)
    assert jnp.allclose(flow["backbone"], ref_feat, rtol=2e-2, atol=2e-2)

    print("KERNEL_OK")
</pallas_src>

<mosaic_0001>
module attributes {stable_mosaic.version = 11 : i64} {
  func.func @_kernel_head_only(%arg0: memref<2x4x256xf32, #tpu.memory_space<vmem>>, %arg1: memref<16x36xbf16, #tpu.memory_space<vmem>>, %arg2: memref<16x1xf32, #tpu.memory_space<vmem>>, %arg3: memref<9x512xf32, #tpu.memory_space<vmem>>, %arg4: memref<2x512xf32, #tpu.memory_space<vmem>>, %arg5: memref<16x8xf32, #tpu.memory_space<vmem>>, %arg6: memref<1x8xf32, #tpu.memory_space<vmem>>, %arg7: memref<2x8xf32, #tpu.memory_space<vmem>>, %arg8: memref<36x512xf32, #tpu.memory_space<vmem>>) attributes {dimension_semantics = [], scalar_prefetch = 0 : i64, scratch_operands = 1 : i64, tpu.core_type = #tpu.core_type<tc>} {
    %c0 = arith.constant 0 : index
    %c0_0 = arith.constant 0 : index
    %c0_1 = arith.constant 0 : index
    %0 = vector.load %arg0[%c0, %c0_0, %c0_1] : memref<2x4x256xf32, #tpu.memory_space<vmem>>, vector<1x4x256xf32>
    %1 = vector.shape_cast %0 : vector<1x4x256xf32> to vector<4x256xf32>
    %c1 = arith.constant 1 : index
    %c0_2 = arith.constant 0 : index
    %c0_3 = arith.constant 0 : index
    %2 = vector.load %arg0[%c1, %c0_2, %c0_3] : memref<2x4x256xf32, #tpu.memory_space<vmem>>, vector<1x4x256xf32>
    %3 = vector.shape_cast %2 : vector<1x4x256xf32> to vector<4x256xf32>
    %4 = tpu.concatenate %1, %3 in 1 : vector<4x256xf32>, vector<4x256xf32> -> vector<4x512xf32>
    %c17_i32 = arith.constant 17 : i32
    %5 = tpu.dynamic_rotate %4 by %c17_i32 dim 1 : vector<4x512xf32>, i32 -> vector<4x512xf32>
    %c0_4 = arith.constant 0 : index
    %c0_5 = arith.constant 0 : index
    %6 = vector.load %arg3[%c0_4, %c0_5] : memref<9x512xf32, #tpu.memory_space<vmem>>, vector<1x512xf32>
    %7 = vector.broadcast %6 : vector<1x512xf32> to vector<4x512xf32>
    %8 = arith.mulf %5, %7 : vector<4x512xf32>
    %c0_6 = arith.constant 0 : index
    %c0_7 = arith.constant 0 : index
    %9 = vector.load %arg8[%c0_6, %c0_7] : memref<36x512xf32, #tpu.memory_space<vmem>>, vector<4x512xf32>
    tpu.vector_store %arg8[%c0_6, %c0_7], %8 {strides = array<i32>} : memref<36x512xf32, #tpu.memory_space<vmem>>, vector<4x512xf32>,
    %c16_i32 = arith.constant 16 : i32
    %10 = tpu.dynamic_rotate %4 by %c16_i32 dim 1 : vector<4x512xf32>, i32 -> vector<4x512xf32>
    %c1_8 = arith.constant 1 : index
    %c0_9 = arith.constant 0 : index
    %11 = vector.load %arg3[%c1_8, %c0_9] : memref<9x512xf32, #tpu.memory_space<vmem>>, vector<1x512xf32>
    %12 = vector.broadcast %11 : vector<1x512xf32> to vector<4x512xf32>
    %13 = arith.mulf %10, %12 : vector<4x512xf32>
    %c4 = arith.constant 4 : index
    %c0_10 = arith.constant 0 : index
    %14 = vector.load %arg8[%c4, %c0_10] : memref<36x512xf32, #tpu.memory_space<vmem>>, vector<4x512xf32>
    tpu.vector_store %arg8[%c4, %c0_10], %13 {strides = array<i32>} : memref<36x512xf32, #tpu.memory_space<vmem>>, vector<4x512xf32>,
    %c15_i32 = arith.constant 15 : i32
    %15 = tpu.dynamic_rotate %4 by %c15_i32 dim 1 : vector<4x512xf32>, i32 -> vector<4x512xf32>
    %c2 = arith.constant 2 : index
    %c0_11 = arith.constant 0 : index
    %16 = vector.load %arg3[%c2, %c0_11] : memref<9x512xf32, #tpu.memory_space<vmem>>, vector<1x512xf32>
    %17 = vector.broadcast %16 : vector<1x512xf32> to vector<4x512xf32>
    %18 = arith.mulf %15, %17 : vector<4x512xf32>
    %c8 = arith.constant 8 : index
    %c0_12 = arith.constant 0 : index
    %19 = vector.load %arg8[%c8, %c0_12] : memref<36x512xf32, #tpu.memory_space<vmem>>, vector<4x512xf32>
    tpu.vector_store %arg8[%c8, %c0_12], %18 {strides = array<i32>} : memref<36x512xf32, #tpu.memory_space<vmem>>, vector<4x512xf32>,
    %c1_i32 = arith.constant 1 : i32
    %20 = tpu.dynamic_rotate %4 by %c1_i32 dim 1 : vector<4x512xf32>, i32 -> vector<4x512xf32>
    %c3 = arith.constant 3 : index
    %c0_13 = arith.constant 0 : index
    %21 = vector.load %arg3[%c3, %c0_13] : memref<9x512xf32, #tpu.memory_space<vmem>>, vector<1x512xf32>
    %22 = vector.broadcast %21 : vector<1x512xf32> to vector<4x512xf32>
    %23 = arith.mulf %20, %22 : vector<4x512xf32>
    %c12 = arith.constant 12 : index
    %c0_14 = arith.constant 0 : index
    %24 = vector.load %arg8[%c12, %c0_14] : memref<36x512xf32, #tpu.memory_space<vmem>>, vector<4x512xf32>
    tpu.vector_store %arg8[%c12, %c0_14], %23 {strides = array<i32>} : memref<36x512xf32, #tpu.memory_space<vmem>>, vector<4x512xf32>,
    %c16 = arith.constant 16 : index
    %c0_15 = arith.constant 0 : index
    %25 = vector.load %arg8[%c16, %c0_15] : memref<36x512xf32, #tpu.memory_space<vmem>>, vector<4x512xf32>
    tpu.vector_store %arg8[%c16, %c0_15], %4 {strides = array<i32>} : memref<36x512xf32, #tpu.memory_space<vmem>>, vector<4x512xf32>,
    %c511_i32 = arith.constant 511 : i32
    %26 = tpu.dynamic_rotate %4 by %c511_i32 dim 1 : vector<4x512xf32>, i32 -> vector<4x512xf32>
    %c5 = arith.constant 5 : index
    %c0_16 = arith.constant 0 : index
    %27 = vector.load %arg3[%c5, %c0_16] : memref<9x512xf32, #tpu.memory_space<vmem>>, vector<1x512xf32>
    %28 = vector.broadcast %27 : vector<1x512xf32> to vector<4x512xf32>
    %29 = arith.mulf %26, %28 : vector<4x512xf32>
    %c20 = arith.constant 20 : index
    %c0_17 = arith.constant 0 : index
    %30 = vector.load %arg8[%c20, %c0_17] : memref<36x512xf32, #tpu.memory_space<vmem>>, vector<4x512xf32>
    tpu.vector_store %arg8[%c20, %c0_17], %29 {strides = array<i32>} : memref<36x512xf32, #tpu.memory_space<vmem>>, vector<4x512xf32>,
    %c497_i32 = arith.constant 497 : i32
    %31 = tpu.dynamic_rotate %4 by %c497_i32 dim 1 : vector<4x512xf32>, i32 -> vector<4x512xf32>
    %c6 = arith.constant 6 : index
    %c0_18 = arith.constant 0 : index
    %32 = vector.load %arg3[%c6, %c0_18] : memref<9x512xf32, #tpu.memory_space<vmem>>, vector<1x512xf32>
    %33 = vector.broadcast %32 : vector<1x512xf32> to vector<4x512xf32>
    %34 = arith.mulf %31, %33 : vector<4x512xf32>
    %c24 = arith.constant 24 : index
    %c0_19 = arith.constant 0 : index
    %35 = vector.load %arg8[%c24, %c0_19] : memref<36x512xf32, #tpu.memory_space<vmem>>, vector<4x512xf32>
    tpu.vector_store %arg8[%c24, %c0_19], %34 {strides = array<i32>} : memref<36x512xf32, #tpu.memory_space<vmem>>, vector<4x512xf32>,
    %c496_i32 = arith.constant 496 : i32
    %36 = tpu.dynamic_rotate %4 by %c496_i32 dim 1 : vector<4x512xf32>, i32 -> vector<4x512xf32>
    %c7 = arith.constant 7 : index
    %c0_20 = arith.constant 0 : index
    %37 = vector.load %arg3[%c7, %c0_20] : memref<9x512xf32, #tpu.memory_space<vmem>>, vector<1x512xf32>
    %38 = vector.broadcast %37 : vector<1x512xf32> to vector<4x512xf32>
    %39 = arith.mulf %36, %38 : vector<4x512xf32>
    %c28 = arith.constant 28 : index
    %c0_21 = arith.constant 0 : index
    %40 = vector.load %arg8[%c28, %c0_21] : memref<36x512xf32, #tpu.memory_space<vmem>>, vector<4x512xf32>
    tpu.vector_store %arg8[%c28, %c0_21], %39 {strides = array<i32>} : memref<36x512xf32, #tpu.memory_space<vmem>>, vector<4x512xf32>,
    %c495_i32 = arith.constant 495 : i32
    %41 = tpu.dynamic_rotate %4 by %c495_i32 dim 1 : vector<4x512xf32>, i32 -> vector<4x512xf32>
    %c8_22 = arith.constant 8 : index
    %c0_23 = arith.constant 0 : index
    %42 = vector.load %arg3[%c8_22, %c0_23] : memref<9x512xf32, #tpu.memory_space<vmem>>, vector<1x512xf32>
    %43 = vector.broadcast %42 : vector<1x512xf32> to vector<4x512xf32>
    %44 = arith.mulf %41, %43 : vector<4x512xf32>
    %c32 = arith.constant 32 : index
    %c0_24 = arith.constant 0 : index
    %45 = vector.load %arg8[%c32, %c0_24] : memref<36x512xf32, #tpu.memory_space<vmem>>, vector<4x512xf32>
    tpu.vector_store %arg8[%c32, %c0_24], %44 {strides = array<i32>} : memref<36x512xf32, #tpu.memory_space<vmem>>, vector<4x512xf32>,
    %c0_25 = arith.constant 0 : index
    %c0_26 = arith.constant 0 : index
    %46 = vector.load %arg1[%c0_25, %c0_26] : memref<16x36xbf16, #tpu.memory_space<vmem>>, vector<16x36xbf16>
    %c0_27 = arith.constant 0 : index
    %c0_28 = arith.constant 0 : index
    %47 = vector.load %arg8[%c0_27, %c0_28] : memref<36x512xf32, #tpu.memory_space<vmem>>, vector<36x512xf32>
    %48 = arith.truncf %47 : vector<36x512xf32> to vector<36x512xbf16>
    %cst = arith.constant dense<0.000000e+00> : vector<16x512xf32>
    %49 = tpu.matmul %46, %48, %cst {dimension_numbers = #tpu.dot_dimension_numbers<[1], [0], [0], [1], [0, 0, 1, 1], [], []>} : vector<16x36xbf16>, vector<36x512xbf16>, vector<16x512xf32> -> vector<16x512xf32>
    %c0_29 = arith.constant 0 : index
    %c0_30 = arith.constant 0 : index
    %50 = vector.load %arg2[%c0_29, %c0_30] : memref<16x1xf32, #tpu.memory_space<vmem>>, vector<16x1xf32>
    %51 = vector.broadcast %50 : vector<16x1xf32> to vector<16x512xf32>
    %52 = arith.addf %49, %51 : vector<16x512xf32>
    %cst_31 = arith.constant 0.000000e+00 : f32
    %53 = vector.broadcast %cst_31 : f32 to vector<16x512xf32>
    %54 = arith.maximumf %52, %53 : vector<16x512xf32>
    %c0_32 = arith.constant 0 : index
    %c0_33 = arith.constant 0 : index
    %55 = vector.load %arg4[%c0_32, %c0_33] : memref<2x512xf32, #tpu.memory_space<vmem>>, vector<2x512xf32>
    %cst_34 = arith.constant dense<0.000000e+00> : vector<2x16xf32>
    %56 = tpu.matmul %55, %54, %cst_34 {dimension_numbers = #tpu.dot_dimension_numbers<[1], [1], [0], [0], [0, 0, 1, 0], [], []>} : vector<2x512xf32>, vector<16x512xf32>, vector<2x16xf32> -> vector<2x16xf32>
    %c0_35 = arith.constant 0 : index
    %c0_36 = arith.constant 0 : index
    %57 = vector.load %arg5[%c0_35, %c0_36] : memref<16x8xf32, #tpu.memory_space<vmem>>, vector<16x8xf32>
    %cst_37 = arith.constant dense<0.000000e+00> : vector<2x8xf32>
    %58 = tpu.matmul %56, %57, %cst_37 {dimension_numbers = #tpu.dot_dimension_numbers<[1], [0], [0], [1], [0, 0, 1, 1], [], []>} : vector<2x16xf32>, vector<16x8xf32>, vector<2x8xf32> -> vector<2x8xf32>
    %c0_38 = arith.constant 0 : index
    %c0_39 = arith.constant 0 : index
    %59 = vector.load %arg6[%c0_38, %c0_39] : memref<1x8xf32, #tpu.memory_space<vmem>>, vector<1x8xf32>
    %60 = vector.broadcast %59 : vector<1x8xf32> to vector<2x8xf32>
    %61 = arith.addf %58, %60 : vector<2x8xf32>
    %c0_40 = arith.constant 0 : index
    %c0_41 = arith.constant 0 : index
    %62 = vector.load %arg7[%c0_40, %c0_41] : memref<2x8xf32, #tpu.memory_space<vmem>>, vector<2x8xf32>
    tpu.vector_store %arg7[%c0_40, %c0_41], %61 {strides = array<i32>} : memref<2x8xf32, #tpu.memory_space<vmem>>, vector<2x8xf32>,
    return
  }
}

</mosaic_0001>

<bundles_post_ra>
// kernel: pipeline_forward.1
= control target key start
LH: loop header
LB: loop body
LE: loop exit
PB: predicated region body
PF: predicated region fallthrough
CT: control target
= control target key end

     0   :  { %s947_s28 = smov 16   ;;  %s1177_s0 = inlined_call_operand.vmem [shape: f32[2,4,256], index: 0, kind: input, shape index: {}]   ;;  %s1178_s1 = inlined_call_operand.vmem [shape: bf16[16,36], index: 1, kind: input, shape index: {}]   ;;  %s1179_s2 = inlined_call_operand.vmem [shape: f32[16,1], index: 2, kind: input, shape index: {}]   ;;  %s1180_s3 = inlined_call_operand.vmem [shape: f32[9,512], index: 3, kind: input, shape index: {}]   ;;  %s1181_s4 = inlined_call_operand.vmem [shape: f32[2,512], index: 4, kind: input, shape index: {}]   ;;  %s1182_s5 = inlined_call_operand.vmem [shape: f32[16,8], index: 5, kind: input, shape index: {}]   ;;  %s1183_s6 = inlined_call_operand.vmem [shape: f32[1,8], index: 6, kind: input, shape index: {}]   ;;  %s1184_s7 = inlined_call_operand.hbm [shape: f32[2,8], index: 7, kind: output, shape index: {}]  }
   0x1   :  { %v866_v0 = vld [vmem:[%s1177_s0 + $0x8] sm:$0xff]  ;;  %v28_v1 = vld [vmem:[%s1177_s0] sm:$0xff] }
   0x2   :  { %86 = vrot.lane.b32.xlu1 %v866_v0, %s947_s28  ;;  %240 = vst [vmem:[#allocation2 + $0x50] sm:$0xf] %v866_v0  ;;  %82 = vrot.lane.b32.xlu0 %v28_v1, %s947_s28  ;;  %238 = vst [vmem:[#allocation2 + $0x40] sm:$0xf] %v28_v1  ;;  %v35_v2 = vcombine.high %v866_v0, %v866_v0  ;;  %v32_v3 = vcombine.high %v28_v1, %v28_v1 }
   0x4   :  { %241 = vst [vmem:[#allocation2 + $0x58] sm:$0xf] %v35_v2  ;;  %239 = vst [vmem:[#allocation2 + $0x48] sm:$0xf] %v32_v3 }
   0x5   :  { %12 = vsyncpa [#allocation4], 0  ;;  %s948_s29 = smov 1   ;;  %s949_s30 = smov 17   ;;  %v955_v4 = vmov 0   ;;  %v476_v5 = vld [vmem:[%s1179_s2] sm:$0xff]  ;;  %v45_v7 = vlaneseq }
   0x6   :  { %88 = vrot.lane.b32.xlu1 %v35_v2, %s947_s28  ;;  %84 = vrot.lane.b32.xlu0 %v32_v3, %s947_s28  ;;  %s950_s0 = smov 15   ;;  %s951_s8 = smov 127   ;;  %v477_v6 = vld [vmem:[%s1179_s2 + $0x8] sm:$0xff]  ;;  %vm497_vm8 = vcmask 1041408   ;;  %vm493_vm9 = vcmask 293888   ;;  %vm958_vm10 = vmmov 0  }
   0x7   :  { %s952_s9 = smov 112   ;;  %s953_s10 = smov 113   ;;  %542 = vmatprep.mubr.bf16.mxu0 %v955_v4  ;;  %585 = vmatprep.mubr.bf16.mxu1 %v955_v4  ;;  %v1013_v8 = vshrl.u32 %v45_v7, 7  ;;  %v1015_v9 = vand.u32 127, %v45_v7  ;;  %vm776_vm11 = vcmask 130048   ;;  %vm850_vm12 = vcmask 58368  }
   0x8   :  { %s954_s11 = smov 111   ;;  %917 = vset.pattern.permute.xlu0 %v955_v4  ;;  %918 = vset.pattern.permute.xlu1 %v955_v4  ;;  %v867_v14 = vld [vmem:[%s1180_s3 + $0x1] ss:$8 sm:$0xf]  ;;  %s960_s14 = smov [#allocation3]  }
   0x9   :  { %v1018_v10 = vsub.s32 0, %v1013_v8  ;;  %v1021_v11 = vsub.s32 3, %v1013_v8  ;;  %v1024_v12 = vsub.s32 1, %v1013_v8  ;;  %v1027_v13 = vsub.s32 2, %v1013_v8  ;;  %s858_s15 = sshll.u32 %s960_s14, 4  ;;  %s859_s15 = int_to_ptr.vmem [resolvable:$true] %s858_s15 }
   0xa   :  { %184 = vrot.lane.b32.xlu1 %v32_v3, %s948_s29  ;;  %182 = vrot.lane.b32.xlu0 %v28_v1, %s948_s29  ;;  %vm90_vm0 = vcmp.lt.s32.totalorder %v1015_v9, 16  ;;  %v869_v17 = vld [vmem:[%s1180_s3 + $0x3] ss:$8 sm:$0xf]  ;;  %vm190_vm1 = vcmp.lt.s32.totalorder %v1015_v9, 1  ;;  %vm47_vm2 = vcmp.lt.s32.totalorder %v1015_v9, 17  ;;  %p928_p1 = scmp.lt.s32.totalorder %s859_s15, %s859_s15 }
   0xb   :  { %v101_v18 = vrot.slane %v867_v14, %v1018_v10  ;;  %v113_v19 = vrot.slane %v867_v14, %v1021_v11  ;;  %v105_v20 = vrot.slane %v867_v14, %v1024_v12  ;;  %v109_v21 = vrot.slane %v867_v14, %v1027_v13  ;;  %v52_v44 = vld [vmem:[%s1180_s3] ss:$8 sm:$0xf] }
   0xc   :  { %v205_v24 = vrot.slane %v869_v17, %v1024_v12  ;;  %v201_v41 = vrot.slane %v869_v17, %v1018_v10  ;;  %v209_v42 = vrot.slane %v869_v17, %v1027_v13  ;;  %v213_v43 = vrot.slane %v869_v17, %v1021_v11 }
   0xd   :  { %v61_v54 = vrot.slane %v52_v44, %v1024_v12  ;;  %v57_v62 = vrot.slane %v52_v44, %v1018_v10  ;;  %v65_v63 = vrot.slane %v52_v44, %v1027_v13  ;;  %vm146_vm3 = vcmp.lt.s32.totalorder %v1015_v9, 15 }
   0xe   :  { %188 = vrot.lane.b32.xlu1 %v35_v2, %s948_s29  ;;  %186 = vrot.lane.b32.xlu0 %v866_v0, %s948_s29  ;;  %vm250_vm4 = vcmp.lt.s32.totalorder %v1015_v9, 127  ;;  %vm350_vm5 = vcmp.lt.s32.totalorder %v1015_v9, 112  ;;  %vm306_vm6 = vcmp.lt.s32.totalorder %v1015_v9, 113  ;;  %vm406_vm7 = vcmp.lt.s32.totalorder %v1015_v9, 111 }
  0x12   :  { %39 = vrot.lane.b32.xlu1 %v32_v3, %s949_s30  ;;  %37 = vrot.lane.b32.xlu0 %v28_v1, %s949_s30 }
  0x16   :  { %43 = vrot.lane.b32.xlu1 %v35_v2, %s949_s30  ;;  %41 = vrot.lane.b32.xlu0 %v866_v0, %s949_s30 }
  0x1a   :  { %140 = vrot.lane.b32.xlu1 %v32_v3, %s950_s0  ;;  %138 = vrot.lane.b32.xlu0 %v28_v1, %s950_s0 }
  0x1e   :  { %144 = vrot.lane.b32.xlu1 %v35_v2, %s950_s0  ;;  %142 = vrot.lane.b32.xlu0 %v866_v0, %s950_s0 }
  0x22   :  { %244 = vrot.lane.b32.xlu1 %v32_v3, %s951_s8  ;;  %242 = vrot.lane.b32.xlu0 %v28_v1, %s951_s8 }
  0x26   :  { %248 = vrot.lane.b32.xlu1 %v35_v2, %s951_s8  ;;  %246 = vrot.lane.b32.xlu0 %v866_v0, %s951_s8 }
  0x2a   :  { %344 = vrot.lane.b32.xlu1 %v32_v3, %s952_s9  ;;  %342 = vrot.lane.b32.xlu0 %v28_v1, %s952_s9 }
  0x2e   :  { %348 = vrot.lane.b32.xlu1 %v35_v2, %s952_s9  ;;  %346 = vrot.lane.b32.xlu0 %v866_v0, %s952_s9 }
  0x32   :  { %300 = vrot.lane.b32.xlu1 %v32_v3, %s953_s10  ;;  %298 = vrot.lane.b32.xlu0 %v28_v1, %s953_s10 }
  0x36   :  { %304 = vrot.lane.b32.xlu1 %v35_v2, %s953_s10  ;;  %302 = vrot.lane.b32.xlu0 %v866_v0, %s953_s10 }
  0x3a   :  { %400 = vrot.lane.b32.xlu1 %v32_v3, %s954_s11  ;;  %398 = vrot.lane.b32.xlu0 %v28_v1, %s954_s11  ;;  %v868_v1 = vld [vmem:[%s1180_s3 + $0x2] ss:$8 sm:$0xf] }
  0x3e   :  { %404 = vrot.lane.b32.xlu1 %v35_v2, %s954_s11  ;;  %402 = vrot.lane.b32.xlu0 %v866_v0, %s954_s11  ;;  %v69_v0 = vrot.slane %v52_v44, %v1021_v11 }
  0x42   :  { %480 = vperm.xlu0 %917, %v476_v5   ;;  %485 = vperm.xlu1 %918, %v477_v6  }
  0x74   :  { %v87_v15 = vpop.permute.xlu1 %86  ;;  %v83_v16 = vpop.permute.xlu0 %82 }
  0x78   :  { %v89_v22 = vpop.permute.xlu1 %88  ;;  %v85_v23 = vpop.permute.xlu0 %84 }
  0x79   :  { %v91_v25 = vsel %vm90_vm0, %v87_v15, %v89_v22  ;;  %v94_v26 = vsel %vm90_vm0, %v89_v22, %v83_v16  ;;  %v92_v27 = vsel %vm90_vm0, %v85_v23, %v87_v15  ;;  %v93_v28 = vsel %vm90_vm0, %v83_v16, %v85_v23 }
  0x7a   :  { %v118_v29 = vmul.f32 %v101_v18, %v94_v26  ;;  %v121_v30 = vmul.f32 %v113_v19, %v91_v25  ;;  %v119_v31 = vmul.f32 %v105_v20, %v93_v28  ;;  %v120_v32 = vmul.f32 %v109_v21, %v92_v27 }
  0x7b   :  { %v161_v16 = vrot.slane %v868_v1, %v1024_v12  ;;  %v157_v21 = vrot.slane %v868_v1, %v1018_v10  ;;  %v165_v22 = vrot.slane %v868_v1, %v1027_v13  ;;  %v169_v23 = vrot.slane %v868_v1, %v1021_v11 }
  0x7c   :  { %v126_v33 = vrot.slane %v118_v29, 4  ;;  %v129_v34 = vrot.slane %v121_v30, 4  ;;  %v127_v35 = vrot.slane %v119_v31, 4  ;;  %v128_v36 = vrot.slane %v120_v32, 4  ;;  %v185_v37 = vpop.permute.xlu1 %184  ;;  %v183_v38 = vpop.permute.xlu0 %182 }
  0x7d   :  { %v193_v39 = vsel %vm190_vm1, %v183_v38, %v185_v37 }
  0x7e   :  { %134 = vst [vmem:[#allocation2] sm:$0xf0] %v126_v33  ;;  %137 = vst [vmem:[#allocation2 + $0x18] sm:$0xf0] %v129_v34  ;;  %v219_v40 = vmul.f32 %v205_v24, %v193_v39 }
  0x7f   :  { %135 = vst [vmem:[#allocation2 + $0x8] sm:$0xf0] %v127_v35  ;;  %136 = vst [vmem:[#allocation2 + $0x10] sm:$0xf0] %v128_v36 }
  0x80   :  { %v227_v45 = vrot.slane %v219_v40, 4  ;;  %v189_v46 = vpop.permute.xlu1 %188  ;;  %v187_v47 = vpop.permute.xlu0 %186  ;;  %v870_v24 = vld [vmem:[%s1180_s3 + $0x5] ss:$8 sm:$0xf] }
  0x81   :  { %v194_v48 = vsel %vm190_vm1, %v189_v46, %v183_v38  ;;  %v191_v49 = vsel %vm190_vm1, %v187_v47, %v189_v46  ;;  %v192_v50 = vsel %vm190_vm1, %v185_v37, %v187_v47  ;;  %v261_v33 = vrot.slane %v870_v24, %v1018_v10 }
  0x82   :  { %235 = vst [vmem:[#allocation2 + $0x28] sm:$0xf0] %v227_v45  ;;  %v218_v51 = vmul.f32 %v201_v41, %v194_v48  ;;  %v220_v52 = vmul.f32 %v209_v42, %v192_v50  ;;  %v221_v53 = vmul.f32 %v213_v43, %v191_v49  ;;  %v273_v38 = vrot.slane %v870_v24, %v1021_v11  ;;  %v872_v43 = vld [vmem:[%s1180_s3 + $0x7] ss:$8 sm:$0xf] }
  0x83   :  { %v265_v39 = vrot.slane %v870_v24, %v1024_v12  ;;  %v269_v40 = vrot.slane %v870_v24, %v1027_v13 }
  0x84   :  { %v226_v55 = vrot.slane %v218_v51, 4  ;;  %v228_v56 = vrot.slane %v220_v52, 4  ;;  %v229_v57 = vrot.slane %v221_v53, 4  ;;  %v40_v58 = vpop.permute.xlu1 %39  ;;  %v38_v59 = vpop.permute.xlu0 %37 }
  0x85   :  { %v50_v60 = vsel %vm47_vm2, %v38_v59, %v40_v58 }
  0x86   :  { %234 = vst [vmem:[#allocation2 + $0x20] sm:$0xf0] %v226_v55  ;;  %236 = vst [vmem:[#allocation2 + $0x30] sm:$0xf0] %v228_v56  ;;  %v75_v61 = vmul.f32 %v61_v54, %v50_v60  ;;  %v361_v54 = vrot.slane %v872_v43, %v1018_v10 }
  0x87   :  { %237 = vst [vmem:[#allocation2 + $0x38] sm:$0xf0] %v229_v57 }
  0x88   :  { %79 = vst [vmem:[#allocation2 + $0x8] sm:$0xf] %v75_v61  ;;  %v44_v2 = vpop.permute.xlu1 %43  ;;  %v42_v3 = vpop.permute.xlu0 %41 }
  0x89   :  { %v51_v4 = vsel %vm47_vm2, %v44_v2, %v38_v59  ;;  %v48_v5 = vsel %vm47_vm2, %v42_v3, %v44_v2  ;;  %v49_v6 = vsel %vm47_vm2, %v40_v58, %v42_v3 }
  0x8a   :  { %v74_v7 = vmul.f32 %v57_v62, %v51_v4  ;;  %v76_v14 = vmul.f32 %v65_v63, %v49_v6  ;;  %v77_v15 = vmul.f32 %v69_v0, %v48_v5 }
  0x8c   :  { %78 = vst [vmem:[#allocation2] sm:$0xf] %v74_v7  ;;  %80 = vst [vmem:[#allocation2 + $0x10] sm:$0xf] %v76_v14  ;;  %v141_v17 = vpop.permute.xlu1 %140  ;;  %v139_v18 = vpop.permute.xlu0 %138  ;;  %v373_v7 = vrot.slane %v872_v43, %v1021_v11  ;;  %v365_v14 = vrot.slane %v872_v43, %v1024_v12 }
  0x8d   :  { %81 = vst [vmem:[#allocation2 + $0x18] sm:$0xf] %v77_v15  ;;  %v149_v19 = vsel %vm146_vm3, %v139_v18, %v141_v17  ;;  %v369_v15 = vrot.slane %v872_v43, %v1027_v13 }
  0x8e   :  { %v175_v20 = vmul.f32 %v161_v16, %v149_v19  ;;  %v871_v16 = vld [vmem:[%s1180_s3 + $0x6] ss:$8 sm:$0xf] }
  0x8f   :  { %v445_v41 = vld [vmem:[#allocation2 + $0x8] sm:$0xff] }
  0x90   :  { %179 = vst [vmem:[#allocation2 + $0x28] sm:$0xf] %v175_v20  ;;  %v145_v25 = vpop.permute.xlu1 %144  ;;  %v143_v26 = vpop.permute.xlu0 %142 }
  0x91   :  { %v150_v27 = vsel %vm146_vm3, %v145_v25, %v139_v18  ;;  %v147_v28 = vsel %vm146_vm3, %v143_v26, %v145_v25  ;;  %v148_v29 = vsel %vm146_vm3, %v141_v17, %v143_v26  ;;  %v317_v26 = vrot.slane %v871_v16, %v1018_v10 }
  0x92   :  { %v174_v30 = vmul.f32 %v157_v21, %v150_v27  ;;  %v176_v31 = vmul.f32 %v165_v22, %v148_v29  ;;  %v177_v32 = vmul.f32 %v169_v23, %v147_v28 }
  0x93   :  { %v444_v55 = vld [vmem:[#allocation2] sm:$0xff]  ;;  %v446_v2 = vld [vmem:[#allocation2 + $0x10] sm:$0xff] }
  0x94   :  { %178 = vst [vmem:[#allocation2 + $0x20] sm:$0xf] %v174_v30  ;;  %180 = vst [vmem:[#allocation2 + $0x30] sm:$0xf] %v176_v31  ;;  %v245_v34 = vpop.permute.xlu1 %244  ;;  %v243_v35 = vpop.permute.xlu0 %242  ;;  %v447_v1 = vld [vmem:[#allocation2 + $0x18] sm:$0xff] }
  0x95   :  { %181 = vst [vmem:[#allocation2 + $0x38] sm:$0xf] %v177_v32  ;;  %v253_v36 = vsel %vm250_vm4, %v243_v35, %v245_v34 }
  0x96   :  { %v278_v37 = vmul.f32 %v261_v33, %v253_v36  ;;  %v325_v36 = vrot.slane %v871_v16, %v1027_v13 }
  0x97   :  { %v449_v42 = vld [vmem:[#allocation2 + $0x28] sm:$0xff] }
  0x98   :  { %v286_v44 = vrot.slane %v278_v37, 4  ;;  %v249_v45 = vpop.permute.xlu1 %248  ;;  %v247_v46 = vpop.permute.xlu0 %246  ;;  %v465_v47 = vpack.c.bf16 %v449_v42, %v445_v41  ;;  %v873_v37 = vld [vmem:[%s1180_s3 + $0x20] ss:$8 sm:$0xf] }
  0x99   :  { %v254_v48 = vsel %vm250_vm4, %v249_v45, %v243_v35  ;;  %v251_v49 = vsel %vm250_vm4, %v247_v46, %v249_v45  ;;  %v252_v50 = vsel %vm250_vm4, %v245_v34, %v247_v46  ;;  %v329_v34 = vrot.slane %v871_v16, %v1021_v11 }
  0x9a   :  { %294 = vst [vmem:[#allocation2 + $0x40] sm:$0xf0] %v286_v44  ;;  %v281_v51 = vmul.f32 %v273_v38, %v254_v48  ;;  %v279_v52 = vmul.f32 %v265_v39, %v252_v50  ;;  %v280_v53 = vmul.f32 %v269_v40, %v251_v49  ;;  %510 = vmatprep.subr.bf16.mxu0 %v465_v47 }
  0x9b   :  { %v448_v56 = vld [vmem:[#allocation2 + $0x20] sm:$0xff]  ;;  %v450_v58 = vld [vmem:[#allocation2 + $0x30] sm:$0xff]  ;;  %v321_v35 = vrot.slane %v871_v16, %v1024_v12  ;;  %v417_v46 = vrot.slane %v873_v37, %v1018_v10 }
  0x9c   :  { %v451_v57 = vld [vmem:[#allocation2 + $0x38] sm:$0xff]  ;;  %v289_v59 = vrot.slane %v281_v51, 4  ;;  %v287_v60 = vrot.slane %v279_v52, 4  ;;  %v288_v61 = vrot.slane %v280_v53, 4  ;;  %v345_v62 = vpop.permute.xlu1 %344  ;;  %v343_v63 = vpop.permute.xlu0 %342  ;;  %v464_v0 = vpack.c.bf16 %v448_v56, %v444_v55 }
  0x9d   :  { %v353_v3 = vsel %vm350_vm5, %v343_v63, %v345_v62  ;;  %v467_v4 = vpack.c.bf16 %v451_v57, %v447_v1  ;;  %v466_v5 = vpack.c.bf16 %v450_v58, %v446_v2  ;;  %v429_v51 = vrot.slane %v873_v37, %v1021_v11 }
  0x9e   :  { %297 = vst [vmem:[#allocation2 + $0x58] sm:$0xf0] %v289_v59  ;;  %295 = vst [vmem:[#allocation2 + $0x48] sm:$0xf0] %v287_v60  ;;  %v378_v6 = vmul.f32 %v361_v54, %v353_v3  ;;  %511 = vmatpush1.bf16.msra.mxu0 %v464_v0  ;;  %v421_v52 = vrot.slane %v873_v37, %v1024_v12  ;;  %v425_v53 = vrot.slane %v873_v37, %v1027_v13 }
  0x9f   :  { %296 = vst [vmem:[#allocation2 + $0x50] sm:$0xf0] %v288_v61  ;;  %553 = vmatprep.subr.bf16.mxu1 %v467_v4 }
  0xa0   :  { %v386_v17 = vrot.slane %v378_v6, 4  ;;  %554 = vmatpush1.bf16.msra.mxu1 %v466_v5  ;;  %v349_v18 = vpop.permute.xlu1 %348  ;;  %v347_v19 = vpop.permute.xlu0 %346 }
  0xa1   :  { %v354_v20 = vsel %vm350_vm5, %v349_v18, %v343_v63  ;;  %v351_v21 = vsel %vm350_vm5, %v347_v19, %v349_v18  ;;  %v352_v22 = vsel %vm350_vm5, %v345_v62, %v347_v19  ;;  %v452_v3 = vld [vmem:[#allocation2 + $0x40] sm:$0xff] }
  0xa2   :  { %394 = vst [vmem:[#allocation2 + $0x60] sm:$0xf0] %v386_v17  ;;  %v381_v23 = vmul.f32 %v373_v7, %v354_v20  ;;  %v379_v24 = vmul.f32 %v365_v14, %v352_v22  ;;  %v380_v25 = vmul.f32 %v369_v15, %v351_v21  ;;  %v921_v21 = vld [vmem:[%s1178_s1] sm:$0xff]   ;;  %v956_v22 = vmov 1983009808  }
  0xa4   :  { %v389_v27 = vrot.slane %v381_v23, 4  ;;  %v387_v28 = vrot.slane %v379_v24, 4  ;;  %v388_v29 = vrot.slane %v380_v25, 4  ;;  %v301_v30 = vpop.permute.xlu1 %300  ;;  %v299_v31 = vpop.permute.xlu0 %298  ;;  %v608_v23 = vunpack.c.l.s4 %v956_v22  ;;  %v604_v25 = vld [vmem:[%s1181_s4] sm:$0xff] }
  0xa5   :  { %v309_v32 = vsel %vm306_vm6, %v299_v31, %v301_v30  ;;  %v453_v58 = vld [vmem:[#allocation2 + $0x48] sm:$0xff]  ;;  %v455_v61 = vld [vmem:[#allocation2 + $0x58] sm:$0xff] }
  0xa6   :  { %397 = vst [vmem:[#allocation2 + $0x78] sm:$0xf0] %v389_v27  ;;  %395 = vst [vmem:[#allocation2 + $0x68] sm:$0xf0] %v387_v28  ;;  %v334_v33 = vmul.f32 %v317_v26, %v309_v32  ;;  %v454_v62 = vld [vmem:[#allocation2 + $0x50] sm:$0xff]  ;;  %v609_v24 = vunpack.c.0.s8 %v608_v23  ;;  %v606_v27 = vcombine.high %v604_v25, %v604_v25 }
  0xa7   :  { %396 = vst [vmem:[#allocation2 + $0x70] sm:$0xf0] %v388_v29 }
  0xa8   :  { %338 = vst [vmem:[#allocation2 + $0x60] sm:$0xf] %v334_v33  ;;  %v305_v38 = vpop.permute.xlu1 %304  ;;  %v303_v39 = vpop.permute.xlu0 %302  ;;  %v612_v26 = vsub.s32 %v609_v24, %v1013_v8 }
  0xa9   :  { %v310_v40 = vsel %vm306_vm6, %v305_v38, %v299_v31  ;;  %v307_v41 = vsel %vm306_vm6, %v303_v39, %v305_v38  ;;  %v308_v42 = vsel %vm306_vm6, %v301_v30, %v303_v39 }
  0xaa   :  { %v337_v43 = vmul.f32 %v329_v34, %v310_v40  ;;  %v335_v44 = vmul.f32 %v321_v35, %v308_v42  ;;  %v336_v45 = vmul.f32 %v325_v36, %v307_v41  ;;  %v613_v28 = vrot.slane %v604_v25, %v612_v26 }
  0xab   :  { %v620_v29 = vrot.slane %v606_v27, %v612_v26 }
  0xac   :  { %341 = vst [vmem:[#allocation2 + $0x78] sm:$0xf] %v337_v43  ;;  %339 = vst [vmem:[#allocation2 + $0x68] sm:$0xf] %v335_v44  ;;  %v401_v47 = vpop.permute.xlu1 %400  ;;  %v399_v48 = vpop.permute.xlu0 %398  ;;  %v621_v30 = vcombine.high %v613_v28, %v613_v28 }
  0xad   :  { %340 = vst [vmem:[#allocation2 + $0x70] sm:$0xf] %v336_v45  ;;  %v409_v49 = vsel %vm406_vm7, %v399_v48, %v401_v47  ;;  %v622_v31 = vcombine.high %v620_v29, %v620_v29 }
  0xae   :  { %v434_v50 = vmul.f32 %v417_v46, %v409_v49 }
  0xaf   :  { %v456_v12 = vld [vmem:[#allocation2 + $0x60] sm:$0xff] }
  0xb0   :  { %438 = vst [vmem:[#allocation2 + $0x80] sm:$0xf] %v434_v50  ;;  %v405_v54 = vpop.permute.xlu1 %404  ;;  %v403_v55 = vpop.permute.xlu0 %402  ;;  %v468_v5 = vpack.c.bf16 %v456_v12, %v452_v3  ;;  %v879_v3 = vld [vmem:[%s1183_s6] ss:$0 sm:$0xff] }
  0xb1   :  { %v410_v10 = vsel %vm406_vm7, %v405_v54, %v399_v48  ;;  %v407_v56 = vsel %vm406_vm7, %v403_v55, %v405_v54  ;;  %v408_v57 = vsel %vm406_vm7, %v401_v47, %v403_v55 }
  0xb2   :  { %v437_v59 = vmul.f32 %v429_v51, %v410_v10  ;;  %v435_v60 = vmul.f32 %v421_v52, %v408_v57  ;;  %v436_v11 = vmul.f32 %v425_v53, %v407_v56 }
  0xb3   :  { %v457_v13 = vld [vmem:[#allocation2 + $0x68] sm:$0xff]  ;;  %v459_v63 = vld [vmem:[#allocation2 + $0x78] sm:$0xff] }
  0xb4   :  { %v458_v0 = vld [vmem:[#allocation2 + $0x70] sm:$0xff]  ;;  %441 = vst [vmem:[#allocation2 + $0x98] sm:$0xf] %v437_v59  ;;  %439 = vst [vmem:[#allocation2 + $0x88] sm:$0xf] %v435_v60  ;;  %v469_v1 = vpack.c.bf16 %v457_v13, %v453_v58  ;;  %v471_v2 = vpack.c.bf16 %v459_v63, %v455_v61  ;;  %v957_v60 = vmov 0.0|0.0  }
  0xb5   :  { %440 = vst [vmem:[#allocation2 + $0x90] sm:$0xf] %v436_v11  ;;  %v470_v4 = vpack.c.bf16 %v458_v0, %v454_v62  ;;  %v767_v11 = vld [vmem:[%s1182_s5] sm:$0xff]  ;;  %v768_v61 = vld [vmem:[%s1182_s5 + $0x8] sm:$0xff]  ;;  %v959_v62 = vmov 0.0   ;;  %s923_s5 = scalar_lea.vmem %s859_s15, 32 }
  0xb6   :  { %512 = vmatprep.subr.bf16.mxu0 %v469_v1  ;;  %555 = vmatprep.subr.bf16.mxu1 %v471_v2  ;;  %v900_v12 = vpack.c.bf16 %v768_v61, %v767_v11  ;;  %p924_p0 = scmp.ne.s32.totalorder %s859_s15, %s923_s5  ;;  %p929_p2 = scmp.lt.s32.totalorder %s923_s5, %s923_s5 }
  0xb7   :  { %513 = vmatpush1.bf16.msra.mxu0 %v468_v5  ;;  %556 = vmatpush1.bf16.msra.mxu1 %v470_v4  ;;  %v460_v9 = vld [vmem:[#allocation2 + $0x80] sm:$0xf] }
  0xb8   :  { %v472_v6 = vpack.c.bf16 %v460_v9, %v460_v9  ;;  %p930_p3 = por %p929_p2, %p928_p1 }
  0xba   :  { %v499_v19 = vsel %vm497_vm8, %v472_v6, 0  ;;  %p931_p4 = pnand %p930_p3, %p924_p0 }
  0xbb   :  { %v461_v7 = vld [vmem:[#allocation2 + $0x88] sm:$0xf]  ;;  %v463_v14 = vld [vmem:[#allocation2 + $0x98] sm:$0xf] }
  0xbc   :  { %v462_v15 = vld [vmem:[#allocation2 + $0x90] sm:$0xf]  ;;  %v473_v16 = vpack.c.bf16 %v461_v7, %v461_v7  ;;  %v475_v17 = vpack.c.bf16 %v463_v14, %v463_v14 }
  0xbd   :  { %v474_v18 = vpack.c.bf16 %v462_v15, %v462_v15 }
  0xbe   :  { %875 = vmatprep.subr.msk.bf16.mxu0 %vm497_vm8, %v473_v16  ;;  %877 = vmatprep.subr.msk.bf16.mxu1 %vm497_vm8, %v475_v17 }
  0xbf   :  { %v505_v20 = vsel %vm497_vm8, %v474_v18, 0  ;;  %515 = vmatpush1.bf16.msra.mxu0 %v499_v19 }
  0xc0   :  { %558 = vmatpush1.bf16.msra.mxu1 %v505_v20 }
  0xc1   :  { %v481_v32 = vpop.permute.xlu0 %480  ;;  %v486_v33 = vpop.permute.xlu1 %485 }
  0xc2   :  { %876 = vmatmul.mubr.msk.bf16.vlgmr.msra.gmra.mrb[0].mxu0 %vm493_vm9, %v921_v21 }
  0xc3   :  { %878 = vmatmul.mubr.msk.bf16.vlgmr.msra.gmra.mrb[0].mxu1 %vm493_vm9, %v921_v21  ;;  %761 = vmatprep.mubr.f32.mxu0 %v622_v31 }
  0xc4   :  { %691 = vmatprep.mubr.f32.mxu1 %v621_v30 }
 0x195   :  { %v544_v35 = vpop.f32.mrb[0].mxu0 }
 0x196   :  { %v587_v34 = vpop.f32.mrb[0].mxu1  ;;  %v545_v37 = vadd.f32 %v544_v35, %v481_v32  ;;  %v546_v38 = vpop.f32.mrb[1].mxu0 }
 0x197   :  { %v588_v36 = vadd.f32 %v587_v34, %v481_v32  ;;  %v589_v39 = vpop.f32.mrb[1].mxu1  ;;  %v547_v40 = vadd.f32 %v546_v38, %v481_v32  ;;  %v548_v42 = vpop.f32.mrb[2].mxu0 }
 0x198   :  { %v590_v41 = vadd.f32 %v589_v39, %v481_v32  ;;  %v591_v43 = vpop.f32.mrb[2].mxu1  ;;  %v549_v8 = vadd.f32 %v548_v42, %v486_v33  ;;  %v550_v45 = vpop.f32.mrb[3].mxu0  ;;  %v596_v50 = vmax.f32 %v545_v37, 0.0 }
 0x199   :  { %v592_v44 = vadd.f32 %v591_v43, %v486_v33  ;;  %v593_v46 = vpop.f32.mrb[3].mxu1  ;;  %v551_v47 = vadd.f32 %v550_v45, %v486_v33  ;;  %v598_v49 = vmax.f32 %v588_v36, 0.0  ;;  %v597_v53 = vmax.f32 %v547_v40, 0.0 }
 0x19a   :  { %v594_v48 = vadd.f32 %v593_v46, %v486_v33  ;;  %v600_v51 = vmax.f32 %v549_v8, 0.0  ;;  %v599_v54 = vmax.f32 %v590_v41, 0.0 }
 0x19b   :  { %v602_v52 = vmax.f32 %v592_v44, 0.0  ;;  %v601_v55 = vmax.f32 %v551_v47, 0.0 }
 0x19c   :  { %v603_v10 = vmax.f32 %v594_v48, 0.0  ;;  %v893_v56 = vpack.c.bf16 %v600_v51, %v596_v50 }
 0x19d   :  { %v897_v57 = vpack.c.bf16 %v602_v52, %v598_v49  ;;  %v891_v58 = vpack.c.bf16 %v601_v55, %v597_v53 }
 0x19e   :  { %v895_v59 = vpack.c.bf16 %v603_v10, %v599_v54 }
 0x19f   :  { %892 = vmatprep.subr.bf16.mxu1 %v891_v58 }
 0x1a0   :  { %896 = vmatprep.subr.bf16.mxu0 %v895_v59  ;;  %894 = vmatpush1.bf16.xpose.msra.mxu1 %v893_v56 }
 0x1a1   :  { %898 = vmatpush1.bf16.xpose.msra.mxu0 %v897_v57  ;;  %899 = vmatprep.subr.bf16.mxu1 %v957_v60 }
 0x1a7   :  { %692 = vmatmul.mubr.f32.vlgmr.msra.gmra.mrb[4].mxu1 %v613_v28 }
 0x1a8   :  { %762 = vmatmul.mubr.f32.vlgmr.msra.gmra.mrb[4].mxu0 %v620_v29  ;;  %901 = vmatpush3.bf16.msra.mxu1 %v900_v12 }
 0x1a9   :  { %888 = vmatprep.mubr.msk.f32.mxu1 %vm958_vm10, %v959_v62 }
 0x27a   :  { %v693_v13 = vpop.f32.mrb[4].mxu1 }
 0x27b   :  { %v763_v63 = vpop.f32.mrb[4].mxu0  ;;  %v695_v1 = vpop.f32.mrb[5].mxu1 }
 0x27c   :  { %v764_v0 = vadd.f32 %v763_v63, %v693_v13  ;;  %v765_v2 = vpop.f32.mrb[5].mxu0 }
 0x27e   :  { %889 = vmatmul.mubr.msk.f32.vlgmr.msra.gmra.mrb[6].mxu1 %vm776_vm11, %v764_v0 }
 0x351   :  { %v846_v4 = vpop.f32.mrb[6].mxu1 }
 0x352   :  { %v847_v5 = vadd.f32 %v879_v3, %v846_v4  ;;  %v890_v9 = vpop.f32.mrb[7].mxu1 }
 0x354   :  { %851 = vst.msk [vmem:[#allocation3] sm:$0x3] %vm850_vm12, %v847_v5 }
 0x355   :  { %934 = shalt.err (!%p931_p4)
}
 0x356   :  { %s935_s17 = scalar_lea.hbm %s1184_s7, 32 }
 0x357   :  { %p936_p5 = scmp.ne.s32.totalorder %s1184_s7, %s935_s17  ;;  %p939_p6 = scmp.lt.u32.totalorder %s935_s17, %s1184_s7 }
 0x359   :  { %p941_p7 = pnand %p939_p6, %p936_p5 }
 0x35b   :  { %944 = shalt.err (!%p941_p7)
}
 0x35c   :  { %861 = dma.vmem_to_hbm [thread:$0]  %s859_s15, 32, %s1184_s7, [#allocation4]  }
 0x35d   :  { %945 = dma.done.wait [#allocation4], 32  }
 0x35e   :  { %946 = vsyncadd [#allocation4], 4294967264 }
 0x35f   :  { %865 = vsyncpa [#allocation4], 1 }

</bundles_post_ra>
